<compile_context>
chip_gen: v7x
topology: tpu7x:2x2x1
jax: 0.10.0
libtpu: 0.0.40
codegen_flags: <defaults>
</compile_context>

<pallas_src>
import functools

import jax
import jax.numpy as jnp
from jax.experimental import pallas as pl
from jax.experimental.pallas import tpu as pltpu


LATENT = 5     # size of mu / logvar / encoded / label
MAX_TB = 512   # max batch rows per grid step (perf-review sweet spot)


# ---------------------------------------------------------------------------
# Static parameter layout: 9 MXU layers packed into one bf16 blob.
# ---------------------------------------------------------------------------
def _pack_layout(in_size):
    """Returns (layers, n_rows, n_cols); layers[i] = (row_off, din, dout,
    bias_row) for fc1..fc4, fused fc51|fc52, fc7..fc10.  Row offsets are
    16-aligned (bf16 sublane packing)."""
    mxu_dims = [(in_size, 128), (128, 64), (64, 32), (32, 16), (16, 2 * LATENT),
                (16, 32), (32, 64), (64, 128), (128, in_size)]
    bias_rows = (0, 1, 2, 3, 4, 6, 7, 8, 9)     # row index in the bias blob
    layers, r = [], 0
    for (din, dout), brow in zip(mxu_dims, bias_rows):
        layers.append((r, din, dout, brow))
        r += -(-din // 16) * 16
    n_cols = max(128, -(-max(d for _, d in mxu_dims) // 128) * 128)
    return tuple(layers), r, n_cols


def init_vae_params(key, xn, yn):
    """PyTorch nn.Linear-style init U(-1/sqrt(fan_in), +1/sqrt(fan_in)); weights
    stored as (in, out).  fc51/fc52 are fused into a single (16, 10) layer.
    Returns [(w, b)] ordered fc1..fc4, fc5_fused, fc6, fc7..fc10."""
    in_size = xn * yn
    dims = [(in_size, 128), (128, 64), (64, 32), (32, 16),
            (16, 2 * LATENT),
            (LATENT, 16), (16, 32), (32, 64), (64, 128), (128, in_size)]
    params, keys = [], jax.random.split(key, 2 * len(dims))
    for i, (din, dout) in enumerate(dims):
        bound = 1.0 / float(din) ** 0.5
        w = jax.random.uniform(keys[2 * i], (din, dout), jnp.float32, -bound, bound)
        b = jax.random.uniform(keys[2 * i + 1], (1, dout), jnp.float32, -bound, bound)
        params.append((w, b))
    return params


def pack_kernel_params(params, in_size):
    """Pack the 10 (w, b) layers into 3 kernel inputs: bf16 weight blob, the
    small f32 fc6 weight, and an f32 bias blob (one layer per row)."""
    layers, n_rows, n_cols = _pack_layout(in_size)
    w_blob = jnp.zeros((n_rows, n_cols), jnp.bfloat16)
    mxu_param_idx = (0, 1, 2, 3, 4, 6, 7, 8, 9)
    for (r, din, dout, _), pi in zip(layers, mxu_param_idx):
        w_blob = w_blob.at[r:r + din, :dout].set(params[pi][0].astype(jnp.bfloat16))
    bias_cols = max(128, -(-in_size // 128) * 128)
    b_blob = jnp.zeros((len(params), bias_cols), jnp.float32)
    for i, (_, b) in enumerate(params):
        b_blob = b_blob.at[i, :b.shape[-1]].set(b.reshape(-1))
    w6 = params[5][0].astype(jnp.float32)                     # (5, 16) f32
    return w_blob, w6, b_blob


# ---------------------------------------------------------------------------
# Kernel
# ---------------------------------------------------------------------------
def vae_kernel(x_ref, eps_ref, w_ref, w6_ref, b_ref, out_ref,
               *, layers, use_mxu_fc6):
    def dense(v, li, relu=True):
        r, din, dout, brow = layers[li]
        y = jnp.dot(v.astype(w_ref.dtype), w_ref[r:r + din, :dout],
                    preferred_element_type=jnp.float32)
        y = y + b_ref[brow:brow + 1, :dout]
        return jnp.maximum(y, 0.0) if relu else y

    x = x_ref[...]

    # ---- encode ----
    h = dense(x, 0)                       # (TB, 128)
    h = dense(h, 1)                       # (TB, 64)
    h = dense(h, 2)                       # (TB, 32)
    h = dense(h, 3)                       # (TB, 16)
    mu_logvar = dense(h, 4, relu=False)   # (TB, 10) = [mu | logvar]
    mu = mu_logvar[:, :LATENT]
    logvar = mu_logvar[:, LATENT:]

    # ---- reparametrize: eps * exp(0.5 * logvar) + mu ----
    std = jnp.exp(0.5 * logvar)
    encoded = eps_ref[...] * std + mu     # (TB, 5) f32

    # ---- decode ----
    b6 = b_ref[5:6, :16]
    w6 = w6_ref[...]                      # (5, 16) f32
    if use_mxu_fc6:
        # v7x: MRB result buffer makes the tiny (K=5) MXU dot cheaper than
        # 5 broadcasts + FMAs on the serial critical path.
        z = jnp.dot(encoded, w6, preferred_element_type=jnp.float32) + b6
    else:
        # v5e / v6e: K=5 is 4% of MXU contraction; do it with f32 VPU FMAs.
        z = encoded[:, 0:1] * w6[0:1, :] + b6
        for k in range(1, LATENT):
            z = z + encoded[:, k:k + 1] * w6[k:k + 1, :]
    z = jnp.maximum(z, 0.0)               # (TB, 16)

    z = dense(z, 5)                       # (TB, 32)
    z = dense(z, 6)                       # (TB, 64)
    z = dense(z, 7)                       # (TB, 128)
    decoded = dense(z, 8, relu=False)     # (TB, in_size)

    # ---- label = softmax(encoded, dim=1) (exact reciprocal -> torch parity) ----
    m = jnp.max(encoded, axis=1, keepdims=True)
    e = jnp.exp(encoded - m)
    label = e / jnp.sum(e, axis=1, keepdims=True)

    # ---- single unmasked full-width store: [decoded | encoded | label | 0] ----
    pad = out_ref.shape[1] - (decoded.shape[1] + 2 * LATENT)
    pieces = [decoded, encoded, label]
    if pad > 0:
        pieces.append(jnp.zeros((decoded.shape[0], pad), jnp.float32))
    out_ref[...] = jnp.concatenate(pieces, axis=-1)


# ---------------------------------------------------------------------------
# Wrapper
# ---------------------------------------------------------------------------
def _batch_tiling(b, *, min_grid=1, max_tb=MAX_TB):
    """Pick (tile, padded_batch).  The tile is a multiple of 8 whenever the
    batch is split; min_grid=2 on v7x keeps both TensorCores busy.  Small
    batches become a single full-array block -> no wrapper-side padding."""
    if min_grid > 1 and b >= 8 * min_grid:
        target = -(-b // min_grid)                 # ceil(b / min_grid)
        tb = min(max_tb, -(-target // 8) * 8)      # round up to sublane multiple
    else:
        tb = b if b <= max_tb else max_tb
    if tb >= b:
        return b, b
    b_pad = -(-b // tb) * tb
    return tb, b_pad


@functools.partial(jax.jit,
                   static_argnames=("in_size", "use_mxu_fc6", "min_grid", "max_tb"))
def vae_forward(x, eps, w_blob, w6, b_blob, *, in_size,
                use_mxu_fc6=False, min_grid=1, max_tb=MAX_TB):
    b = x.shape[0]
    tb, b_pad = _batch_tiling(b, min_grid=min_grid, max_tb=max_tb)
    nb = b_pad // tb
    if b_pad != b:
        # Only hit for ragged multi-tile batches; single-block batches never pad.
        x = jnp.pad(x, ((0, b_pad - b), (0, 0)))
        eps = jnp.pad(eps, ((0, b_pad - b), (0, 0)))
    out_w = -(-(in_size + 2 * LATENT) // 128) * 128

    layers, _, _ = _pack_layout(in_size)
    kernel = functools.partial(vae_kernel, layers=layers, use_mxu_fc6=use_mxu_fc6)

    const = lambda i: (0, 0)   # params: full-array blocks, VMEM-resident across steps
    slab = pl.pallas_call(
        kernel,
        out_shape=jax.ShapeDtypeStruct((b_pad, out_w), jnp.float32),
        grid_spec=pltpu.PrefetchScalarGridSpec(
            num_scalar_prefetch=0,
            grid=(nb,),
            in_specs=[
                pl.BlockSpec((tb, in_size), lambda i: (i, 0)),
                pl.BlockSpec((tb, LATENT), lambda i: (i, 0)),
                pl.BlockSpec(w_blob.shape, const),
                pl.BlockSpec(w6.shape, const),
                pl.BlockSpec(b_blob.shape, const),
            ],
            out_specs=pl.BlockSpec((tb, out_w), lambda i: (i, 0)),
        ),
        compiler_params=pltpu.CompilerParams(
            dimension_semantics=("parallel",)),
    )(x, eps, w_blob, w6, b_blob)

    decoded = slab[:b, :in_size]
    encoded = slab[:b, in_size:in_size + LATENT]
    label = slab[:b, in_size + LATENT:in_size + 2 * LATENT]
    return encoded, decoded, label


def vae_reference(x, eps, w_blob, w6, b_blob, in_size):
    """Pure-JAX mirror of the kernel math (same packed bf16 weights)."""
    layers, _, _ = _pack_layout(in_size)

    def dense(v, li, relu=True):
        r, din, dout, brow = layers[li]
        w = w_blob[r:r + din, :dout]
        y = jnp.dot(v.astype(w.dtype), w, preferred_element_type=jnp.float32)
        y = y + b_blob[brow:brow + 1, :dout]
        return jnp.maximum(y, 0.0) if relu else y

    h = dense(x, 0); h = dense(h, 1); h = dense(h, 2); h = dense(h, 3)
    ml = dense(h, 4, relu=False)
    mu, logvar = ml[:, :LATENT], ml[:, LATENT:]
    encoded = eps * jnp.exp(0.5 * logvar) + mu
    z = jnp.maximum(jnp.dot(encoded, w6, preferred_element_type=jnp.float32)
                    + b_blob[5:6, :16], 0.0)
    z = dense(z, 5); z = dense(z, 6); z = dense(z, 7)
    decoded = dense(z, 8, relu=False)
    label = jax.nn.softmax(encoded, axis=1)
    return encoded, decoded, label


if __name__ == "__main__":
    # Small shapes consistent with the module: xn=8, yn=8 -> inSize=64, batch=8.
    xn, yn, batch = 8, 8, 8
    in_size = xn * yn

    key = jax.random.PRNGKey(0)
    k_params, k_x, k_eps = jax.random.split(key, 3)

    params = init_vae_params(k_params, xn, yn)
    w_blob, w6, b_blob = pack_kernel_params(params, in_size)

    x = jax.random.normal(k_x, (batch, in_size), dtype=jnp.float32)
    eps = jax.random.normal(k_eps, (batch, LATENT), dtype=jnp.float32)

    # fc6 via MXU and >=2 grid steps only on v7x (2 TensorCores, MRB).
    kind = jax.devices()[0].device_kind.lower()
    is_v7 = "v7" in kind

    encoded, decoded, label = vae_forward(
        x, eps, w_blob, w6, b_blob, in_size=in_size,
        use_mxu_fc6=is_v7, min_grid=2 if is_v7 else 1)
    jax.block_until_ready((encoded, decoded, label))

    assert encoded.shape == (batch, LATENT)
    assert decoded.shape == (batch, in_size)
    assert label.shape == (batch, LATENT)

    # Validate against a pure-JAX reference using the same bf16 matmul dtypes.
    enc_ref, dec_ref, lab_ref = vae_reference(x, eps, w_blob, w6, b_blob, in_size)
    assert jnp.allclose(encoded, enc_ref, atol=2e-3, rtol=2e-3)
    assert jnp.allclose(decoded, dec_ref, atol=2e-3, rtol=2e-3)
    assert jnp.allclose(label, lab_ref, atol=1e-3, rtol=1e-3)
    # exact-reciprocal softmax: rows sum to 1 to f32 precision
    assert jnp.allclose(jnp.sum(label, axis=1), 1.0, atol=1e-5)

    print("KERNEL_OK")
</pallas_src>

<mosaic_0001>
module attributes {stable_mosaic.version = 11 : i64} {
  func.func @vae_kernel(%arg0: i32, %arg1: memref<8x64xf32, #tpu.memory_space<vmem>>, %arg2: memref<8x5xf32, #tpu.memory_space<vmem>>, %arg3: memref<544x128xbf16, #tpu.memory_space<vmem>>, %arg4: memref<5x16xf32, #tpu.memory_space<vmem>>, %arg5: memref<10x128xf32, #tpu.memory_space<vmem>>, %arg6: memref<8x128xf32, #tpu.memory_space<vmem>>) attributes {dimension_semantics = [#tpu.dimension_semantics<parallel>], iteration_bounds = array<i64: 1>, scalar_prefetch = 0 : i64, scratch_operands = 0 : i64, tpu.core_type = #tpu.core_type<tc>, window_params = [{transform_indices = @transform_0, window_bounds = array<i64: 8, 64>}, {transform_indices = @transform_1, window_bounds = array<i64: 8, 5>}, {pipeline_mode = #tpu.pipeline_mode<synchronous>, transform_indices = @transform_2, window_bounds = array<i64: 544, 128>}, {pipeline_mode = #tpu.pipeline_mode<synchronous>, transform_indices = @transform_3, window_bounds = array<i64: 5, 16>}, {pipeline_mode = #tpu.pipeline_mode<synchronous>, transform_indices = @transform_4, window_bounds = array<i64: 10, 128>}, {transform_indices = @transform_5, window_bounds = array<i64: 8, 128>}]} {
    %c0 = arith.constant 0 : index
    %c0_0 = arith.constant 0 : index
    %0 = vector.load %arg1[%c0, %c0_0] : memref<8x64xf32, #tpu.memory_space<vmem>>, vector<8x64xf32>
    %1 = arith.truncf %0 : vector<8x64xf32> to vector<8x64xbf16>
    %c0_1 = arith.constant 0 : index
    %c0_2 = arith.constant 0 : index
    %2 = vector.load %arg3[%c0_1, %c0_2] : memref<544x128xbf16, #tpu.memory_space<vmem>>, vector<64x128xbf16>
    %cst = arith.constant dense<0.000000e+00> : vector<8x128xf32>
    %3 = tpu.matmul %1, %2, %cst {dimension_numbers = #tpu.dot_dimension_numbers<[1], [0], [0], [1], [0, 0, 1, 1], [], []>} : vector<8x64xbf16>, vector<64x128xbf16>, vector<8x128xf32> -> vector<8x128xf32>
    %c0_3 = arith.constant 0 : index
    %c0_4 = arith.constant 0 : index
    %4 = vector.load %arg5[%c0_3, %c0_4] : memref<10x128xf32, #tpu.memory_space<vmem>>, vector<1x128xf32>
    %5 = vector.broadcast %4 : vector<1x128xf32> to vector<8x128xf32>
    %6 = arith.addf %3, %5 : vector<8x128xf32>
    %cst_5 = arith.constant 0.000000e+00 : f32
    %7 = vector.broadcast %cst_5 : f32 to vector<8x128xf32>
    %8 = arith.maximumf %6, %7 : vector<8x128xf32>
    %9 = arith.truncf %8 : vector<8x128xf32> to vector<8x128xbf16>
    %c64 = arith.constant 64 : index
    %c0_6 = arith.constant 0 : index
    %10 = vector.load %arg3[%c64, %c0_6] : memref<544x128xbf16, #tpu.memory_space<vmem>>, vector<128x64xbf16>
    %cst_7 = arith.constant dense<0.000000e+00> : vector<8x64xf32>
    %11 = tpu.matmul %9, %10, %cst_7 {dimension_numbers = #tpu.dot_dimension_numbers<[1], [0], [0], [1], [0, 0, 1, 1], [], []>} : vector<8x128xbf16>, vector<128x64xbf16>, vector<8x64xf32> -> vector<8x64xf32>
    %c1 = arith.constant 1 : index
    %c0_8 = arith.constant 0 : index
    %12 = vector.load %arg5[%c1, %c0_8] : memref<10x128xf32, #tpu.memory_space<vmem>>, vector<1x64xf32>
    %13 = vector.broadcast %12 : vector<1x64xf32> to vector<8x64xf32>
    %14 = arith.addf %11, %13 : vector<8x64xf32>
    %cst_9 = arith.constant 0.000000e+00 : f32
    %15 = vector.broadcast %cst_9 : f32 to vector<8x64xf32>
    %16 = arith.maximumf %14, %15 : vector<8x64xf32>
    %17 = arith.truncf %16 : vector<8x64xf32> to vector<8x64xbf16>
    %c192 = arith.constant 192 : index
    %c0_10 = arith.constant 0 : index
    %18 = vector.load %arg3[%c192, %c0_10] : memref<544x128xbf16, #tpu.memory_space<vmem>>, vector<64x32xbf16>
    %cst_11 = arith.constant dense<0.000000e+00> : vector<8x32xf32>
    %19 = tpu.matmul %17, %18, %cst_11 {dimension_numbers = #tpu.dot_dimension_numbers<[1], [0], [0], [1], [0, 0, 1, 1], [], []>} : vector<8x64xbf16>, vector<64x32xbf16>, vector<8x32xf32> -> vector<8x32xf32>
    %c2 = arith.constant 2 : index
    %c0_12 = arith.constant 0 : index
    %20 = vector.load %arg5[%c2, %c0_12] : memref<10x128xf32, #tpu.memory_space<vmem>>, vector<1x32xf32>
    %21 = vector.broadcast %20 : vector<1x32xf32> to vector<8x32xf32>
    %22 = arith.addf %19, %21 : vector<8x32xf32>
    %cst_13 = arith.constant 0.000000e+00 : f32
    %23 = vector.broadcast %cst_13 : f32 to vector<8x32xf32>
    %24 = arith.maximumf %22, %23 : vector<8x32xf32>
    %25 = arith.truncf %24 : vector<8x32xf32> to vector<8x32xbf16>
    %c256 = arith.constant 256 : index
    %c0_14 = arith.constant 0 : index
    %26 = vector.load %arg3[%c256, %c0_14] : memref<544x128xbf16, #tpu.memory_space<vmem>>, vector<32x16xbf16>
    %cst_15 = arith.constant dense<0.000000e+00> : vector<8x16xf32>
    %27 = tpu.matmul %25, %26, %cst_15 {dimension_numbers = #tpu.dot_dimension_numbers<[1], [0], [0], [1], [0, 0, 1, 1], [], []>} : vector<8x32xbf16>, vector<32x16xbf16>, vector<8x16xf32> -> vector<8x16xf32>
    %c3 = arith.constant 3 : index
    %c0_16 = arith.constant 0 : index
    %28 = vector.load %arg5[%c3, %c0_16] : memref<10x128xf32, #tpu.memory_space<vmem>>, vector<1x16xf32>
    %29 = vector.broadcast %28 : vector<1x16xf32> to vector<8x16xf32>
    %30 = arith.addf %27, %29 : vector<8x16xf32>
    %cst_17 = arith.constant 0.000000e+00 : f32
    %31 = vector.broadcast %cst_17 : f32 to vector<8x16xf32>
    %32 = arith.maximumf %30, %31 : vector<8x16xf32>
    %33 = arith.truncf %32 : vector<8x16xf32> to vector<8x16xbf16>
    %c288 = arith.constant 288 : index
    %c0_18 = arith.constant 0 : index
    %34 = vector.load %arg3[%c288, %c0_18] : memref<544x128xbf16, #tpu.memory_space<vmem>>, vector<16x10xbf16>
    %cst_19 = arith.constant dense<0.000000e+00> : vector<8x10xf32>
    %35 = tpu.matmul %33, %34, %cst_19 {dimension_numbers = #tpu.dot_dimension_numbers<[1], [0], [0], [1], [0, 0, 1, 1], [], []>} : vector<8x16xbf16>, vector<16x10xbf16>, vector<8x10xf32> -> vector<8x10xf32>
    %c4 = arith.constant 4 : index
    %c0_20 = arith.constant 0 : index
    %36 = vector.load %arg5[%c4, %c0_20] : memref<10x128xf32, #tpu.memory_space<vmem>>, vector<1x10xf32>
    %37 = vector.broadcast %36 : vector<1x10xf32> to vector<8x10xf32>
    %38 = arith.addf %35, %37 : vector<8x10xf32>
    %39 = vector.extract_strided_slice %38 {offsets = [0, 0], sizes = [8, 5], strides = [1, 1]} : vector<8x10xf32> to vector<8x5xf32>
    %40 = vector.extract_strided_slice %38 {offsets = [0, 5], sizes = [8, 5], strides = [1, 1]} : vector<8x10xf32> to vector<8x5xf32>
    %cst_21 = arith.constant 5.000000e-01 : f32
    %41 = vector.broadcast %cst_21 : f32 to vector<8x5xf32>
    %42 = arith.mulf %41, %40 : vector<8x5xf32>
    %43 = math.exp %42 : vector<8x5xf32>
    %c0_22 = arith.constant 0 : index
    %c0_23 = arith.constant 0 : index
    %44 = vector.load %arg2[%c0_22, %c0_23] : memref<8x5xf32, #tpu.memory_space<vmem>>, vector<8x5xf32>
    %45 = arith.mulf %44, %43 : vector<8x5xf32>
    %46 = arith.addf %45, %39 : vector<8x5xf32>
    %c5 = arith.constant 5 : index
    %c0_24 = arith.constant 0 : index
    %47 = vector.load %arg5[%c5, %c0_24] : memref<10x128xf32, #tpu.memory_space<vmem>>, vector<1x16xf32>
    %c0_25 = arith.constant 0 : index
    %c0_26 = arith.constant 0 : index
    %48 = vector.load %arg4[%c0_25, %c0_26] : memref<5x16xf32, #tpu.memory_space<vmem>>, vector<5x16xf32>
    %49 = vector.extract_strided_slice %46 {offsets = [0, 0], sizes = [8, 1], strides = [1, 1]} : vector<8x5xf32> to vector<8x1xf32>
    %50 = vector.extract_strided_slice %48 {offsets = [0, 0], sizes = [1, 16], strides = [1, 1]} : vector<5x16xf32> to vector<1x16xf32>
    %51 = vector.broadcast %49 : vector<8x1xf32> to vector<8x16xf32>
    %52 = vector.broadcast %50 : vector<1x16xf32> to vector<8x16xf32>
    %53 = arith.mulf %51, %52 : vector<8x16xf32>
    %54 = vector.broadcast %47 : vector<1x16xf32> to vector<8x16xf32>
    %55 = arith.addf %53, %54 : vector<8x16xf32>
    %56 = vector.extract_strided_slice %46 {offsets = [0, 1], sizes = [8, 1], strides = [1, 1]} : vector<8x5xf32> to vector<8x1xf32>
    %57 = vector.extract_strided_slice %48 {offsets = [1, 0], sizes = [1, 16], strides = [1, 1]} : vector<5x16xf32> to vector<1x16xf32>
    %58 = vector.broadcast %56 : vector<8x1xf32> to vector<8x16xf32>
    %59 = vector.broadcast %57 : vector<1x16xf32> to vector<8x16xf32>
    %60 = arith.mulf %58, %59 : vector<8x16xf32>
    %61 = arith.addf %55, %60 : vector<8x16xf32>
    %62 = vector.extract_strided_slice %46 {offsets = [0, 2], sizes = [8, 1], strides = [1, 1]} : vector<8x5xf32> to vector<8x1xf32>
    %63 = vector.extract_strided_slice %48 {offsets = [2, 0], sizes = [1, 16], strides = [1, 1]} : vector<5x16xf32> to vector<1x16xf32>
    %64 = vector.broadcast %62 : vector<8x1xf32> to vector<8x16xf32>
    %65 = vector.broadcast %63 : vector<1x16xf32> to vector<8x16xf32>
    %66 = arith.mulf %64, %65 : vector<8x16xf32>
    %67 = arith.addf %61, %66 : vector<8x16xf32>
    %68 = vector.extract_strided_slice %46 {offsets = [0, 3], sizes = [8, 1], strides = [1, 1]} : vector<8x5xf32> to vector<8x1xf32>
    %69 = vector.extract_strided_slice %48 {offsets = [3, 0], sizes = [1, 16], strides = [1, 1]} : vector<5x16xf32> to vector<1x16xf32>
    %70 = vector.broadcast %68 : vector<8x1xf32> to vector<8x16xf32>
    %71 = vector.broadcast %69 : vector<1x16xf32> to vector<8x16xf32>
    %72 = arith.mulf %70, %71 : vector<8x16xf32>
    %73 = arith.addf %67, %72 : vector<8x16xf32>
    %74 = vector.extract_strided_slice %46 {offsets = [0, 4], sizes = [8, 1], strides = [1, 1]} : vector<8x5xf32> to vector<8x1xf32>
    %75 = vector.extract_strided_slice %48 {offsets = [4, 0], sizes = [1, 16], strides = [1, 1]} : vector<5x16xf32> to vector<1x16xf32>
    %76 = vector.broadcast %74 : vector<8x1xf32> to vector<8x16xf32>
    %77 = vector.broadcast %75 : vector<1x16xf32> to vector<8x16xf32>
    %78 = arith.mulf %76, %77 : vector<8x16xf32>
    %79 = arith.addf %73, %78 : vector<8x16xf32>
    %cst_27 = arith.constant 0.000000e+00 : f32
    %80 = vector.broadcast %cst_27 : f32 to vector<8x16xf32>
    %81 = arith.maximumf %79, %80 : vector<8x16xf32>
    %82 = arith.truncf %81 : vector<8x16xf32> to vector<8x16xbf16>
    %c304 = arith.constant 304 : index
    %c0_28 = arith.constant 0 : index
    %83 = vector.load %arg3[%c304, %c0_28] : memref<544x128xbf16, #tpu.memory_space<vmem>>, vector<16x32xbf16>
    %cst_29 = arith.constant dense<0.000000e+00> : vector<8x32xf32>
    %84 = tpu.matmul %82, %83, %cst_29 {dimension_numbers = #tpu.dot_dimension_numbers<[1], [0], [0], [1], [0, 0, 1, 1], [], []>} : vector<8x16xbf16>, vector<16x32xbf16>, vector<8x32xf32> -> vector<8x32xf32>
    %c6 = arith.constant 6 : index
    %c0_30 = arith.constant 0 : index
    %85 = vector.load %arg5[%c6, %c0_30] : memref<10x128xf32, #tpu.memory_space<vmem>>, vector<1x32xf32>
    %86 = vector.broadcast %85 : vector<1x32xf32> to vector<8x32xf32>
    %87 = arith.addf %84, %86 : vector<8x32xf32>
    %cst_31 = arith.constant 0.000000e+00 : f32
    %88 = vector.broadcast %cst_31 : f32 to vector<8x32xf32>
    %89 = arith.maximumf %87, %88 : vector<8x32xf32>
    %90 = arith.truncf %89 : vector<8x32xf32> to vector<8x32xbf16>
    %c320 = arith.constant 320 : index
    %c0_32 = arith.constant 0 : index
    %91 = vector.load %arg3[%c320, %c0_32] : memref<544x128xbf16, #tpu.memory_space<vmem>>, vector<32x64xbf16>
    %cst_33 = arith.constant dense<0.000000e+00> : vector<8x64xf32>
    %92 = tpu.matmul %90, %91, %cst_33 {dimension_numbers = #tpu.dot_dimension_numbers<[1], [0], [0], [1], [0, 0, 1, 1], [], []>} : vector<8x32xbf16>, vector<32x64xbf16>, vector<8x64xf32> -> vector<8x64xf32>
    %c7 = arith.constant 7 : index
    %c0_34 = arith.constant 0 : index
    %93 = vector.load %arg5[%c7, %c0_34] : memref<10x128xf32, #tpu.memory_space<vmem>>, vector<1x64xf32>
    %94 = vector.broadcast %93 : vector<1x64xf32> to vector<8x64xf32>
    %95 = arith.addf %92, %94 : vector<8x64xf32>
    %cst_35 = arith.constant 0.000000e+00 : f32
    %96 = vector.broadcast %cst_35 : f32 to vector<8x64xf32>
    %97 = arith.maximumf %95, %96 : vector<8x64xf32>
    %98 = arith.truncf %97 : vector<8x64xf32> to vector<8x64xbf16>
    %c352 = arith.constant 352 : index
    %c0_36 = arith.constant 0 : index
    %99 = vector.load %arg3[%c352, %c0_36] : memref<544x128xbf16, #tpu.memory_space<vmem>>, vector<64x128xbf16>
    %cst_37 = arith.constant dense<0.000000e+00> : vector<8x128xf32>
    %100 = tpu.matmul %98, %99, %cst_37 {dimension_numbers = #tpu.dot_dimension_numbers<[1], [0], [0], [1], [0, 0, 1, 1], [], []>} : vector<8x64xbf16>, vector<64x128xbf16>, vector<8x128xf32> -> vector<8x128xf32>
    %c8 = arith.constant 8 : index
    %c0_38 = arith.constant 0 : index
    %101 = vector.load %arg5[%c8, %c0_38] : memref<10x128xf32, #tpu.memory_space<vmem>>, vector<1x128xf32>
    %102 = vector.broadcast %101 : vector<1x128xf32> to vector<8x128xf32>
    %103 = arith.addf %100, %102 : vector<8x128xf32>
    %cst_39 = arith.constant 0.000000e+00 : f32
    %104 = vector.broadcast %cst_39 : f32 to vector<8x128xf32>
    %105 = arith.maximumf %103, %104 : vector<8x128xf32>
    %106 = arith.truncf %105 : vector<8x128xf32> to vector<8x128xbf16>
    %c416 = arith.constant 416 : index
    %c0_40 = arith.constant 0 : index
    %107 = vector.load %arg3[%c416, %c0_40] : memref<544x128xbf16, #tpu.memory_space<vmem>>, vector<128x64xbf16>
    %cst_41 = arith.constant dense<0.000000e+00> : vector<8x64xf32>
    %108 = tpu.matmul %106, %107, %cst_41 {dimension_numbers = #tpu.dot_dimension_numbers<[1], [0], [0], [1], [0, 0, 1, 1], [], []>} : vector<8x128xbf16>, vector<128x64xbf16>, vector<8x64xf32> -> vector<8x64xf32>
    %c9 = arith.constant 9 : index
    %c0_42 = arith.constant 0 : index
    %109 = vector.load %arg5[%c9, %c0_42] : memref<10x128xf32, #tpu.memory_space<vmem>>, vector<1x64xf32>
    %110 = vector.broadcast %109 : vector<1x64xf32> to vector<8x64xf32>
    %111 = arith.addf %108, %110 : vector<8x64xf32>
    %cst_43 = arith.constant dense<0xFF800000> : vector<8xf32>
    %112 = vector.multi_reduction <maximumf>, %46, %cst_43 [1] : vector<8x5xf32> to vector<8xf32>
    %113 = vector.shape_cast %112 : vector<8xf32> to vector<8x1xf32>
    %114 = vector.broadcast %113 : vector<8x1xf32> to vector<8x5xf32>
    %115 = arith.subf %46, %114 : vector<8x5xf32>
    %116 = math.exp %115 : vector<8x5xf32>
    %cst_44 = arith.constant dense<0.000000e+00> : vector<8xf32>
    %117 = vector.multi_reduction <add>, %116, %cst_44 [1] : vector<8x5xf32> to vector<8xf32>
    %118 = vector.shape_cast %117 : vector<8xf32> to vector<8x1xf32>
    %119 = vector.broadcast %118 : vector<8x1xf32> to vector<8x5xf32>
    %120 = arith.divf %116, %119 : vector<8x5xf32>
    %cst_45 = arith.constant 0.000000e+00 : f32
    %121 = vector.broadcast %cst_45 : f32 to vector<8x54xf32>
    %122 = tpu.concatenate %111, %46, %120, %121 in 1 : vector<8x64xf32>, vector<8x5xf32>, vector<8x5xf32>, vector<8x54xf32> -> vector<8x128xf32>
    %c0_46 = arith.constant 0 : index
    %c0_47 = arith.constant 0 : index
    %123 = vector.load %arg6[%c0_46, %c0_47] : memref<8x128xf32, #tpu.memory_space<vmem>>, vector<8x128xf32>
    tpu.vector_store %arg6[%c0_46, %c0_47], %122 {strides = array<i32>} : memref<8x128xf32, #tpu.memory_space<vmem>>, vector<8x128xf32>,
    return
  }
  func.func @transform_0(%arg0: i32) -> (i32, i32) {
    %c0_i32 = arith.constant 0 : i32
    %c0_i32_0 = arith.constant 0 : i32
    return %arg0, %c0_i32 : i32, i32
  }
  func.func @transform_1(%arg0: i32) -> (i32, i32) {
    %c0_i32 = arith.constant 0 : i32
    %c0_i32_0 = arith.constant 0 : i32
    return %arg0, %c0_i32 : i32, i32
  }
  func.func @transform_2(%arg0: i32) -> (i32, i32) {
    %c0_i32 = arith.constant 0 : i32
    %c0_i32_0 = arith.constant 0 : i32
    %c0_i32_1 = arith.constant 0 : i32
    return %c0_i32, %c0_i32_0 : i32, i32
  }
  func.func @transform_3(%arg0: i32) -> (i32, i32) {
    %c0_i32 = arith.constant 0 : i32
    %c0_i32_0 = arith.constant 0 : i32
    %c0_i32_1 = arith.constant 0 : i32
    return %c0_i32, %c0_i32_0 : i32, i32
  }
  func.func @transform_4(%arg0: i32) -> (i32, i32) {
    %c0_i32 = arith.constant 0 : i32
    %c0_i32_0 = arith.constant 0 : i32
    %c0_i32_1 = arith.constant 0 : i32
    return %c0_i32, %c0_i32_0 : i32, i32
  }
  func.func @transform_5(%arg0: i32) -> (i32, i32) {
    %c0_i32 = arith.constant 0 : i32
    %c0_i32_0 = arith.constant 0 : i32
    return %arg0, %c0_i32 : i32, i32
  }
}

</mosaic_0001>

<bundles_post_ra>
// kernel: vae_forward.1
= control target key start
LH: loop header
LB: loop body
LE: loop exit
PB: predicated region body
PF: predicated region fallthrough
CT: control target
= control target key end

     0   :  { %10 = vsyncpa [#allocation3], 0  ;;  %s1410_s0 = inlined_call_operand.hbm [shape: f32[8,64], index: 0, kind: input, shape index: {}]   ;;  %s1411_s1 = inlined_call_operand.hbm [shape: f32[8,5], index: 1, kind: input, shape index: {}]   ;;  %s1412_s2 = inlined_call_operand.hbm [shape: bf16[544,128], index: 2, kind: input, shape index: {}]   ;;  %s1413_s3 = inlined_call_operand.vmem [shape: f32[5,16], index: 3, kind: input, shape index: {}]   ;;  %s1414_s4 = inlined_call_operand.hbm [shape: f32[10,128], index: 4, kind: input, shape index: {}]   ;;  %s1415_s5 = inlined_call_operand.vmem [shape: f32[8,128], index: 5, kind: output, shape index: {}]  }
   0x1   :  { %11 = vsyncpa [#allocation5], 0 }
   0x2   :  { %12 = vsyncpa [#allocation8], 0  ;;  %s1244_s18 = smov [#allocation4]   ;;  %s1245_s20 = smov [#allocation2]  }
   0x3   :  { %s29_s19 = sshll.u32 %s1244_s18, 4  ;;  %s19_s21 = sshll.u32 %s1245_s20, 4  ;;  %s30_s19 = int_to_ptr.vmem [resolvable:$true] %s29_s19  ;;  %s20_s21 = int_to_ptr.vmem [resolvable:$true] %s19_s21 }
   0x4   :  { %s1150_s24 = scalar_lea.hbm %s1411_s1, 128 }
   0x5   :  { %p1151_p0 = scmp.ne.s32.totalorder %s1411_s1, %s1150_s24  ;;  %p1154_p1 = scmp.lt.u32.totalorder %s1150_s24, %s1411_s1 }
   0x7   :  { %p1156_p2 = pnand %p1154_p1, %p1151_p0 }
   0x9   :  { %1159 = shalt.err (!%p1156_p2)
}
   0xa   :  { %s1160_s29 = scalar_lea.vmem %s30_s19, 128  ;;  %p1165_p4 = scmp.lt.s32.totalorder %s30_s19, %s30_s19 }
   0xb   :  { %p1161_p3 = scmp.ne.s32.totalorder %s30_s19, %s1160_s29  ;;  %p1166_p5 = scmp.lt.s32.totalorder %s1160_s29, %s1160_s29 }
   0xd   :  { %p1167_p6 = por %p1166_p5, %p1165_p4 }
   0xf   :  { %p1168_p7 = pnand %p1167_p6, %p1161_p3 }
  0x11   :  { %1171 = shalt.err (!%p1168_p7)
}
  0x12   :  { %32 = dma.hbm_to_vmem [thread:$0]  %s1411_s1, 128, %s30_s19, [#allocation5]  }
  0x13   :  { %s1172_s9 = scalar_lea.hbm %s1410_s0, 128 }
  0x14   :  { %p1173_p8 = scmp.ne.s32.totalorder %s1410_s0, %s1172_s9  ;;  %p1176_p9 = scmp.lt.u32.totalorder %s1172_s9, %s1410_s0 }
  0x16   :  { %p1178_p10 = pnand %p1176_p9, %p1173_p8 }
  0x18   :  { %1181 = shalt.err (!%p1178_p10)
}
  0x19   :  { %s1182_s14 = scalar_lea.vmem %s20_s21, 128  ;;  %p1187_p12 = scmp.lt.s32.totalorder %s20_s21, %s20_s21 }
  0x1a   :  { %p1183_p11 = scmp.ne.s32.totalorder %s20_s21, %s1182_s14  ;;  %p1188_p13 = scmp.lt.s32.totalorder %s1182_s14, %s1182_s14 }
  0x1c   :  { %p1189_p0 = por %p1188_p13, %p1187_p12 }
  0x1e   :  { %p1190_p1 = pnand %p1189_p0, %p1183_p11 }
  0x20   :  { %1193 = shalt.err (!%p1190_p1)
}
  0x21   :  { %22 = dma.hbm_to_vmem [thread:$0]  %s1410_s0, 128, %s20_s21, [#allocation3]  }
  0x22   :  { %s1246_s16 = smov [#allocation6]   ;;  %s1194_s20 = scalar_lea.hbm %s1412_s2, 4352 }
  0x23   :  { %s38_s17 = sshll.u32 %s1246_s16, 4  ;;  %p1195_p2 = scmp.ne.s32.totalorder %s1412_s2, %s1194_s20  ;;  %s39_s17 = int_to_ptr.vmem [resolvable:$true] %s38_s17 }
  0x24   :  { %p1198_p3 = scmp.lt.u32.totalorder %s1194_s20, %s1412_s2 }
  0x26   :  { %p1200_p4 = pnand %p1198_p3, %p1195_p2 }
  0x28   :  { %1203 = shalt.err (!%p1200_p4)
}
  0x29   :  { %s1204_s26 = scalar_lea.vmem %s39_s17, 4352  ;;  %p1209_p6 = scmp.lt.s32.totalorder %s39_s17, %s39_s17 }
  0x2a   :  { %p1205_p5 = scmp.ne.s32.totalorder %s39_s17, %s1204_s26  ;;  %p1210_p7 = scmp.lt.s32.totalorder %s1204_s26, %s1204_s26 }
  0x2c   :  { %p1211_p8 = por %p1210_p7, %p1209_p6 }
  0x2e   :  { %p1212_p9 = pnand %p1211_p8, %p1205_p5 }
  0x30   :  { %1215 = shalt.err (!%p1212_p9)
}
  0x31   :  { %s1247_s0 = smov 64   ;;  %s1248_s21 = smov 4  }
  0x32   :  { %44 = dma.hbm_to_vmem [thread:$0]  %s1412_s2, 4352, %s39_s17, [#allocation5], %s1247_s0, %s1247_s0, %s1248_s21  }
  0x33   :  { %s1249_s29 = smov [#allocation7]   ;;  %s1216_s8 = scalar_lea.hbm %s1414_s4, 256 }
  0x34   :  { %s52_s30 = sshll.u32 %s1249_s29, 4  ;;  %p1217_p10 = scmp.ne.s32.totalorder %s1414_s4, %s1216_s8  ;;  %s53_s30 = int_to_ptr.vmem [resolvable:$true] %s52_s30 }
  0x35   :  { %p1220_p11 = scmp.lt.u32.totalorder %s1216_s8, %s1414_s4 }
  0x37   :  { %p1222_p12 = pnand %p1220_p11, %p1217_p10 }
  0x39   :  { %1225 = shalt.err (!%p1222_p12)
}
  0x3a   :  { %s1226_s13 = scalar_lea.vmem %s53_s30, 256  ;;  %p1231_p0 = scmp.lt.s32.totalorder %s53_s30, %s53_s30 }
  0x3b   :  { %p1227_p13 = scmp.ne.s32.totalorder %s53_s30, %s1226_s13  ;;  %p1232_p1 = scmp.lt.s32.totalorder %s1226_s13, %s1226_s13 }
  0x3d   :  { %p1233_p2 = por %p1232_p1, %p1231_p0 }
  0x3f   :  { %p1234_p3 = pnand %p1233_p2, %p1227_p13 }
  0x41   :  { %1237 = shalt.err (!%p1234_p3)
}
  0x42   :  { %s1250_s2 = smov 128   ;;  %s1251_s14 = smov 8  }
  0x43   :  { %58 = dma.hbm_to_vmem [thread:$0]  %s1414_s4, 256, %s53_s30, [#allocation8], %s1250_s2, %s1250_s2, %s1251_s14  }
  0x44   :  { %1238 = dma.done.wait [#allocation3], 128  }
  0x45   :  { %1239 = vsyncadd [#allocation3], 4294967168 }
  0x46   :  { %1240 = dma.done.wait [#allocation5], 4480  }
  0x47   :  { %1241 = vsyncadd [#allocation5], 4294962816 }
  0x48   :  { %1242 = dma.done.wait [#allocation8], 256  }
  0x49   :  { %1243 = vsyncadd [#allocation8], 4294967040  ;;  %v1252_v0 = vmov 0.0   ;;  %vm1253_vm0 = vmmov 0   ;;  %v1110_v1 = vld [vmem:[#allocation6] sm:$0xff]   ;;  %v1111_v2 = vld [vmem:[#allocation6 + $0x8] sm:$0xff]  }
  0x4a   :  { %984 = vmatprep.subr.bf16.mxu0 %v1252_v0  ;;  %992 = vmatprep.mubr.msk.bf16.mxu0 %vm1253_vm0, %v1252_v0  ;;  %v1114_v3 = vld [vmem:[#allocation6 + $0x20] sm:$0xff]   ;;  %v1112_v4 = vld [vmem:[#allocation6 + $0x10] sm:$0xff]   ;;  %v1115_v5 = vld [vmem:[#allocation6 + $0x28] sm:$0xff]   ;;  %vm111_vm1 = vcmask 523264   ;;  %vm371_vm2 = vcmask 261120   ;;  %vm430_vm3 = vcmask 130048  }
  0x4b   :  { %996 = vmatprep.subr.bf16.mxu1 %v1252_v0  ;;  %1012 = vmatprep.mubr.msk.bf16.mxu1 %vm1253_vm0, %v1252_v0  ;;  %v1113_v6 = vld [vmem:[#allocation6 + $0x18] sm:$0xff]   ;;  %v72_v7 = vld [vmem:[#allocation2] sm:$0xff]  ;;  %v1118_v11 = vld [vmem:[#allocation6 + $0x40] sm:$0xff]   ;;  %v1254_v62 = vmov 1   ;;  %v1255_v63 = vmov 0   ;;  %s1256_s4 = smov 123  }
  0x4c   :  { %985 = vmatpush3.bf16.msra.mxu0 %v1110_v1  ;;  %997 = vmatpush3.bf16.msra.mxu1 %v1114_v3  ;;  %v1116_v8 = vld [vmem:[#allocation6 + $0x30] sm:$0xff]   ;;  %v73_v9 = vpack.c.bf16 %v72_v7, %v72_v7  ;;  %v1117_v10 = vld [vmem:[#allocation6 + $0x38] sm:$0xff]   ;;  %v1119_v12 = vld [vmem:[#allocation6 + $0x48] sm:$0xff]   ;;  %v1258_v7 = vmov 4   ;;  %vm858_vm4 = vcmask 39936   ;;  %vm878_vm5 = vcmask 564224  }
  0x4d   :  { %986 = vmatprep.subr.bf16.mxu0 %v1252_v0  ;;  %998 = vmatprep.subr.bf16.mxu1 %v1252_v0  ;;  %v1120_v13 = vld [vmem:[#allocation6 + $0x50] sm:$0xff]   ;;  %v1121_v14 = vld [vmem:[#allocation6 + $0x58] sm:$0xff]   ;;  %v1122_v15 = vld [vmem:[#allocation6 + $0x60] sm:$0xff]   ;;  %vm880_vm6 = vcmask 605184  }
  0x4e   :  { %v1123_v16 = vld [vmem:[#allocation6 + $0x68] sm:$0xff]   ;;  %v890_v17 = vld [vmem:[#allocation7] ss:$0 sm:$0xff]  ;;  %v1125_v26 = vld [vmem:[#allocation6 + $0x78] sm:$0xff]   ;;  %1106 = vset.pattern.permute.xlu1 %v1254_v62  ;;  %1105 = vset.pattern.permute.xlu0 %v1255_v63 }
  0x4f   :  { %v1124_v25 = vld [vmem:[#allocation6 + $0x70] sm:$0xff]   ;;  %v1126_v34 = vld [vmem:[#allocation6 + $0x80] sm:$0xff]   ;;  %v1127_v36 = vld [vmem:[#allocation6 + $0x88] sm:$0xff]  }
  0x50   :  { %987 = vmatpush3.bf16.msra.mxu0 %v1111_v2  ;;  %999 = vmatpush3.bf16.msra.mxu1 %v1115_v5  ;;  %v896_v27 = vld [vmem:[#allocation7 + $0x1] ss:$0 sm:$0xff]  ;;  %v905_v37 = vld [vmem:[#allocation7 + $0x2] ss:$0 sm:$0xff]  ;;  %v911_v46 = vld [vmem:[#allocation7 + $0x3] ss:$0 sm:$0xff] }
  0x51   :  { %988 = vmatprep.subr.bf16.mxu0 %v1252_v0  ;;  %1000 = vmatprep.subr.bf16.mxu1 %v1252_v0  ;;  %v1128_v44 = vld [vmem:[#allocation6 + $0x90] sm:$0xff]   ;;  %v477_v2 = vld [vmem:[#allocation4] sm:$0xff]  ;;  %v1134_v62 = vld [vmem:[#allocation6 + $0xc0] sm:$0xff]  }
  0x52   :  { %v915_v54 = vld [vmem:[#allocation7 + $0x4] ss:$0 sm:$0xff]  ;;  %v1135_v63 = vld [vmem:[#allocation6 + $0xc8] sm:$0xff]  }
  0x54   :  { %989 = vmatpush3.bf16.msra.mxu0 %v1112_v4  ;;  %1001 = vmatpush3.bf16.msra.mxu1 %v1116_v8  ;;  %v1259_v8 = vmov 3  }
  0x55   :  { %990 = vmatprep.subr.bf16.mxu0 %v1252_v0  ;;  %1002 = vmatprep.subr.bf16.mxu1 %v1252_v0 }
  0x58   :  { %991 = vmatpush3.bf16.msra.mxu0 %v1113_v6  ;;  %1003 = vmatpush3.bf16.msra.mxu1 %v1117_v10  ;;  %v1257_v6 = vmov 2  }
  0x59   :  { %1016 = vmatprep.subr.bf16.mxu0 %v1252_v0  ;;  %1004 = vmatprep.subr.bf16.mxu1 %v1252_v0 }
  0x5b   :  { %993 = vmatmul.mubr.msk.bf16.vlgmr.msra.gmra.mrb[0].mxu0 %vm111_vm1, %v73_v9  ;;  %v1129_v9 = vld [vmem:[#allocation6 + $0x98] sm:$0xff]  }
  0x5c   :  { %1024 = vmatprep.mubr.msk.bf16.mxu0 %vm1253_vm0, %v1252_v0  ;;  %1005 = vmatpush3.bf16.msra.mxu1 %v1118_v11  ;;  %v491_v11 = vlaneseq }
  0x5d   :  { %1006 = vmatprep.subr.bf16.mxu1 %v1252_v0  ;;  %1017 = vmatpush3.bf16.msra.mxu0 %v1122_v15 }
  0x5e   :  { %1018 = vmatprep.subr.bf16.mxu0 %v1252_v0 }
  0x60   :  { %1007 = vmatpush3.bf16.msra.mxu1 %v1119_v12  ;;  %v492_v12 = vshrl.u32 %v491_v11, 7 }
  0x61   :  { %1008 = vmatprep.subr.bf16.mxu1 %v1252_v0  ;;  %1019 = vmatpush3.bf16.msra.mxu0 %v1123_v16 }
  0x62   :  { %1020 = vmatprep.subr.bf16.mxu0 %v1252_v0  ;;  %v507_v15 = vsub.s32 1, %v492_v12 }
  0x64   :  { %1009 = vmatpush3.bf16.msra.mxu1 %v1120_v13  ;;  %v493_v13 = vsub.s32 0, %v492_v12 }
  0x65   :  { %1010 = vmatprep.subr.bf16.mxu1 %v1252_v0  ;;  %1021 = vmatpush3.bf16.msra.mxu0 %v1124_v25  ;;  %v527_v25 = vsub.s32 3, %v492_v12 }
  0x66   :  { %1022 = vmatprep.subr.bf16.mxu0 %v1252_v0 }
  0x68   :  { %1011 = vmatpush3.bf16.msra.mxu1 %v1121_v14  ;;  %v485_v14 = vld [vmem:[%s1413_s3] sm:$0x1f]  ;;  %s1260_s3 = smov 69  }
  0x69   :  { %1048 = vmatprep.subr.bf16.mxu1 %v1252_v0  ;;  %1023 = vmatpush3.bf16.msra.mxu0 %v1125_v26  ;;  %v494_v16 = vrot.slane %v485_v14, %v493_v13 }
  0x6a   :  { %1028 = vmatprep.subr.bf16.mxu0 %v1252_v0 }
 0x12e   :  { %v149_v18 = vpop.f32.mrb[0].mxu0 }
 0x12f   :  { %v150_v19 = vadd.f32 %v890_v17, %v149_v18  ;;  %v994_v20 = vpop.f32.mrb[1].mxu0  ;;  %v517_v17 = vsub.s32 2, %v492_v12 }
 0x130   :  { %v152_v21 = vpop.f32.mrb[2].mxu0 }
 0x131   :  { %v155_v22 = vmax.f32 %v150_v19, 0.0  ;;  %v995_v23 = vpop.f32.mrb[3].mxu0  ;;  %v918_v19 = vld [vmem:[#allocation7 + $0x5] ss:$0 sm:$0xff]  ;;  %v508_v21 = vrot.slane %v485_v14, %v507_v15  ;;  %v1142_v15 = vld [vmem:[#allocation6 + $0x100] sm:$0xff]  }
 0x133   :  { %v156_v24 = vpack.c.bf16 %v155_v22, %v155_v22 }
 0x135   :  { %1013 = vmatmul.mubr.bf16.vlgmr.msra.gmra.mrb[0].mxu1 %v156_v24  ;;  %v518_v24 = vrot.slane %v485_v14, %v517_v17  ;;  %v926_v17 = vld [vmem:[#allocation7 + $0x8] ss:$0 sm:$0xff] }
 0x136   :  { %1052 = vmatprep.mubr.msk.bf16.mxu1 %vm1253_vm0, %v1252_v0 }
 0x208   :  { %v260_v28 = vpop.f32.mrb[0].mxu1 }
 0x209   :  { %v261_v29 = vadd.f32 %v896_v27, %v260_v28  ;;  %v1014_v30 = vpop.f32.mrb[1].mxu1  ;;  %v537_v28 = vsub.s32 4, %v492_v12 }
 0x20a   :  { %v263_v31 = vpop.f32.mrb[2].mxu1 }
 0x20b   :  { %v266_v32 = vmax.f32 %v261_v29, 0.0  ;;  %v1015_v33 = vpop.f32.mrb[3].mxu1  ;;  %v528_v31 = vrot.slane %v485_v14, %v527_v25  ;;  %v932_v25 = vld [vmem:[#allocation7 + $0x9] ss:$0 sm:$0xff] }
 0x20d   :  { %v267_v35 = vpack.c.bf16 %v266_v32, %v266_v32  ;;  %v538_v32 = vrot.slane %v485_v14, %v537_v28 }
 0x20f   :  { %1025 = vmatmul.mubr.msk.bf16.vlgmr.msra.gmra.mrb[4].mxu0 %vm111_vm1, %v267_v35 }
 0x210   :  { %1029 = vmatpush3.bf16.msra.mxu0 %v1126_v34  ;;  %1032 = vmatprep.mubr.msk.bf16.mxu0 %vm1253_vm0, %v1252_v0 }
 0x211   :  { %1030 = vmatprep.subr.bf16.mxu0 %v1252_v0 }
 0x214   :  { %1031 = vmatpush3.bf16.msra.mxu0 %v1127_v36 }
 0x215   :  { %1036 = vmatprep.subr.bf16.mxu0 %v1252_v0 }
 0x2e2   :  { %v342_v38 = vpop.f32.mrb[4].mxu0 }
 0x2e3   :  { %v343_v39 = vadd.f32 %v905_v37, %v342_v38  ;;  %v1026_v40 = vpop.f32.mrb[5].mxu0 }
 0x2e4   :  { %v345_v41 = vpop.f32.mrb[6].mxu0 }
 0x2e5   :  { %v348_v42 = vmax.f32 %v343_v39, 0.0  ;;  %v1027_v43 = vpop.f32.mrb[7].mxu0 }
 0x2e7   :  { %v349_v45 = vpack.c.bf16 %v348_v42, %v348_v42 }
 0x2e9   :  { %1033 = vmatmul.mubr.msk.bf16.vlgmr.msra.gmra.mrb[8].mxu0 %vm371_vm2, %v349_v45 }
 0x2ea   :  { %1037 = vmatpush3.bf16.msra.mxu0 %v1128_v44  ;;  %1038 = vmatprep.mubr.msk.bf16.mxu0 %vm1253_vm0, %v1252_v0 }
 0x2eb   :  { %1042 = vmatprep.subr.bf16.mxu0 %v1252_v0 }
 0x3bc   :  { %v409_v47 = vpop.f32.mrb[8].mxu0 }
 0x3bd   :  { %v410_v48 = vadd.f32 %v911_v46, %v409_v47  ;;  %v1034_v49 = vpop.f32.mrb[9].mxu0  ;;  %v1130_v47 = vld [vmem:[#allocation6 + $0xa0] sm:$0xff]  }
 0x3be   :  { %v412_v50 = vpop.f32.mrb[10].mxu0  ;;  %1049 = vmatpush3.bf16.msra.mxu1 %v1130_v47 }
 0x3bf   :  { %v415_v51 = vmax.f32 %v410_v48, 0.0  ;;  %v1035_v52 = vpop.f32.mrb[11].mxu0  ;;  %1050 = vmatprep.subr.bf16.mxu1 %v1252_v0  ;;  %v1131_v48 = vld [vmem:[#allocation6 + $0xa8] sm:$0xff]   ;;  %v1132_v50 = vld [vmem:[#allocation6 + $0xb0] sm:$0xff]  }
 0x3c1   :  { %v416_v53 = vpack.c.bf16 %v415_v51, %v415_v51  ;;  %v1133_v51 = vld [vmem:[#allocation6 + $0xb8] sm:$0xff]  }
 0x3c2   :  { %1051 = vmatpush3.bf16.msra.mxu1 %v1131_v48 }
 0x3c3   :  { %1039 = vmatmul.mubr.msk.bf16.vlgmr.msra.gmra.mrb[12].mxu0 %vm430_vm3, %v416_v53  ;;  %1068 = vmatprep.subr.bf16.mxu1 %v1252_v0 }
 0x3c4   :  { %1044 = vmatprep.mubr.msk.bf16.mxu0 %vm1253_vm0, %v1252_v0  ;;  %1043 = vmatpush3.bf16.msra.mxu0 %v1129_v9 }
 0x3c5   :  { %1056 = vmatprep.subr.bf16.mxu0 %v1252_v0 }
 0x496   :  { %v468_v55 = vpop.f32.mrb[12].mxu0 }
 0x497   :  { %v469_v56 = vadd.f32 %v915_v54, %v468_v55  ;;  %v1040_v57 = vpop.f32.mrb[13].mxu0  ;;  %v919_v54 = vld [vmem:[#allocation7 + $0x6] ss:$0 sm:$0xff] }
 0x498   :  { %v471_v58 = vpop.f32.mrb[14].mxu0 }
 0x499   :  { %v474_v59 = vmul.f32 0.5, %v469_v56  ;;  %v1041_v60 = vpop.f32.mrb[15].mxu0 }
 0x49b   :  { %v475_v61 = vmul.f32 1.442695, %v474_v59 }
 0x49d   :  { %1144 = vpow2.f32 %v475_v61 }
 0x4a7   :  { %v1145_v1 = vpop.eup %1144 }
 0x4a8   :  { %479 = vrot.lane.b32.xlu0 %v1145_v1, %s1256_s4  ;;  %v1136_v1 = vld [vmem:[#allocation6 + $0xd0] sm:$0xff]  }
 0x51a   :  { %v480_v3 = vpop.permute.xlu0 %479 }
 0x51b   :  { %v482_v4 = vmul.f32 %v480_v3, %v477_v2  ;;  %v1137_v2 = vld [vmem:[#allocation6 + $0xd8] sm:$0xff]   ;;  %v1138_v3 = vld [vmem:[#allocation6 + $0xe0] sm:$0xff]  }
 0x51d   :  { %v483_v5 = vadd.f32 %v482_v4, %v469_v56  ;;  %v1139_v4 = vld [vmem:[#allocation6 + $0xe8] sm:$0xff]  }
 0x51f   :  { %502 = vperm.xlu1 %1106, %v483_v5   ;;  %488 = vperm.xlu0 %1105, %v483_v5   ;;  %v859_v10 = vsel %vm858_vm4, %v483_v5, -inf }
 0x523   :  { %1107 = vset.pattern.permute.xlu1 %v1257_v6  ;;  %1109 = vset.pattern.permute.xlu0 %v1258_v7  ;;  %v1141_v6 = vld [vmem:[#allocation6 + $0xf8] sm:$0xff]   ;;  %v922_v7 = vld [vmem:[#allocation7 + $0x7] ss:$0 sm:$0xff] }
 0x524   :  { %512 = vperm.xlu1 %1107, %v483_v5   ;;  %532 = vperm.xlu0 %1109, %v483_v5  }
 0x528   :  { %1108 = vset.pattern.permute.xlu1 %v1259_v8 }
 0x529   :  { %522 = vperm.xlu1 %1108, %v483_v5  }
 0x54d   :  { %860 = vmax.xlane.f32.xlu1 %v859_v10 }
 0x55e   :  { %870 = vrot.lane.b32.xlu1 %v483_v5, %s1247_s0 }
 0x59e   :  { %v503_v18 = vpop.permute.xlu1 %502  ;;  %v489_v20 = vpop.permute.xlu0 %488 }
 0x59f   :  { %v495_v22 = vmul.f32 %v494_v16, %v489_v20  ;;  %v509_v26 = vmul.f32 %v508_v21, %v503_v18  ;;  %v1143_v16 = vld [vmem:[#allocation6 + $0x108] sm:$0xff]  }
 0x5a1   :  { %v500_v23 = vadd.f32 %v918_v19, %v495_v22 }
 0x5a3   :  { %v513_v27 = vpop.permute.xlu1 %512  ;;  %v510_v29 = vadd.f32 %v509_v26, %v500_v23  ;;  %v533_v33 = vpop.permute.xlu0 %532 }
 0x5a4   :  { %v519_v30 = vmul.f32 %v518_v24, %v513_v27  ;;  %v539_v37 = vmul.f32 %v538_v32, %v533_v33 }
 0x5a6   :  { %v520_v35 = vadd.f32 %v519_v30, %v510_v29 }
 0x5a8   :  { %v523_v34 = vpop.permute.xlu1 %522 }
 0x5a9   :  { %v529_v36 = vmul.f32 %v528_v31, %v523_v34 }
 0x5ab   :  { %v530_v38 = vadd.f32 %v529_v36, %v520_v35 }
 0x5ad   :  { %v540_v39 = vadd.f32 %v539_v37, %v530_v38 }
 0x5af   :  { %v541_v40 = vmax.f32 %v540_v39, 0.0 }
 0x5b1   :  { %v542_v41 = vpack.c.bf16 %v541_v40, %v541_v40 }
 0x5b3   :  { %1045 = vmatmul.mubr.msk.bf16.vlgmr.msra.gmra.mrb[16].mxu0 %vm430_vm3, %v542_v41 }
 0x5b4   :  { %1064 = vmatprep.mubr.msk.bf16.mxu0 %vm1253_vm0, %v1252_v0  ;;  %1057 = vmatpush3.bf16.msra.mxu0 %v1132_v50 }
 0x5b5   :  { %1058 = vmatprep.subr.bf16.mxu0 %v1252_v0 }
 0x5b8   :  { %1059 = vmatpush3.bf16.msra.mxu0 %v1133_v51 }
 0x5b9   :  { %1060 = vmatprep.subr.bf16.mxu0 %v1252_v0 }
 0x5bc   :  { %1061 = vmatpush3.bf16.msra.mxu0 %v1134_v62 }
 0x5bd   :  { %1062 = vmatprep.subr.bf16.mxu0 %v1252_v0 }
 0x5c0   :  { %1063 = vmatpush3.bf16.msra.mxu0 %v1135_v63 }
 0x5da   :  { %v861_v42 = vpop.xlane.xlu1 %860 }
 0x5db   :  { %v862_v43 = vsub.f32 %v483_v5, %v861_v42  ;;  %v1140_v5 = vld [vmem:[#allocation6 + $0xf0] sm:$0xff]  }
 0x5dd   :  { %v863_v44 = vmul.f32 1.442695, %v862_v43 }
 0x5de   :  { %v871_v29 = vpop.permute.xlu1 %870 }
 0x5df   :  { %1146 = vpow2.f32 %v863_v44 }
 0x5e9   :  { %v1147_v45 = vpop.eup %1146 }
 0x5ea   :  { %v865_v46 = vsel %vm858_vm4, %v1147_v45, 0.0 }
 0x5eb   :  { %866 = vadd.xlane.f32.xlu0 %v865_v46 }
 0x678   :  { %v867_v49 = vpop.xlane.xlu0 %866 }
 0x679   :  { %1148 = vrcp.f32 %v867_v49 }
 0x683   :  { %v1149_v52 = vpop.eup %1148 }
 0x684   :  { %v869_v53 = vmul.f32 %v1149_v52, %v1147_v45 }
 0x686   :  { %874 = vrot.lane.b32.xlu0 %v869_v53, %s1260_s3  ;;  %v593_v55 = vpop.f32.mrb[16].mxu0 }
 0x687   :  { %v594_v56 = vadd.f32 %v919_v54, %v593_v55  ;;  %v1046_v57 = vpop.f32.mrb[17].mxu0 }
 0x688   :  { %v596_v58 = vpop.f32.mrb[18].mxu0 }
 0x689   :  { %v599_v59 = vmax.f32 %v594_v56, 0.0  ;;  %v1047_v60 = vpop.f32.mrb[19].mxu0 }
 0x68b   :  { %v600_v61 = vpack.c.bf16 %v599_v59, %v599_v59 }
 0x68d   :  { %1053 = vmatmul.mubr.msk.bf16.vlgmr.msra.gmra.mrb[4].mxu1 %vm371_vm2, %v600_v61 }
 0x68e   :  { %1084 = vmatprep.mubr.msk.bf16.mxu1 %vm1253_vm0, %v1252_v0  ;;  %1069 = vmatpush3.bf16.msra.mxu1 %v1136_v1 }
 0x68f   :  { %1070 = vmatprep.subr.bf16.mxu1 %v1252_v0 }
 0x692   :  { %1071 = vmatpush3.bf16.msra.mxu1 %v1137_v2 }
 0x693   :  { %1072 = vmatprep.subr.bf16.mxu1 %v1252_v0 }
 0x696   :  { %1073 = vmatpush3.bf16.msra.mxu1 %v1138_v3 }
 0x697   :  { %1074 = vmatprep.subr.bf16.mxu1 %v1252_v0 }
 0x69a   :  { %1075 = vmatpush3.bf16.msra.mxu1 %v1139_v4 }
 0x69b   :  { %1076 = vmatprep.subr.bf16.mxu1 %v1252_v0 }
 0x69e   :  { %1077 = vmatpush3.bf16.msra.mxu1 %v1140_v5 }
 0x69f   :  { %1078 = vmatprep.subr.bf16.mxu1 %v1252_v0 }
 0x6a2   :  { %1079 = vmatpush3.bf16.msra.mxu1 %v1141_v6 }
 0x6a3   :  { %1080 = vmatprep.subr.bf16.mxu1 %v1252_v0 }
 0x6a6   :  { %1081 = vmatpush3.bf16.msra.mxu1 %v1142_v15 }
 0x6a7   :  { %1082 = vmatprep.subr.bf16.mxu1 %v1252_v0 }
 0x6aa   :  { %1083 = vmatpush3.bf16.msra.mxu1 %v1143_v16 }
 0x6f8   :  { %v875_v0 = vpop.permute.xlu0 %874 }
 0x760   :  { %v659_v8 = vpop.f32.mrb[4].mxu1 }
 0x761   :  { %v660_v9 = vadd.f32 %v922_v7, %v659_v8  ;;  %v1054_v10 = vpop.f32.mrb[5].mxu1 }
 0x762   :  { %v662_v11 = vpop.f32.mrb[6].mxu1 }
 0x763   :  { %v665_v12 = vmax.f32 %v660_v9, 0.0  ;;  %v1055_v13 = vpop.f32.mrb[7].mxu1 }
 0x765   :  { %v666_v14 = vpack.c.bf16 %v665_v12, %v665_v12 }
 0x767   :  { %1065 = vmatmul.mubr.msk.bf16.vlgmr.msra.gmra.mrb[20].mxu0 %vm111_vm1, %v666_v14 }
 0x83a   :  { %v741_v18 = vpop.f32.mrb[20].mxu0 }
 0x83b   :  { %v742_v19 = vadd.f32 %v926_v17, %v741_v18  ;;  %v1066_v20 = vpop.f32.mrb[21].mxu0 }
 0x83c   :  { %v744_v21 = vpop.f32.mrb[22].mxu0 }
 0x83d   :  { %v747_v22 = vmax.f32 %v742_v19, 0.0  ;;  %v1067_v23 = vpop.f32.mrb[23].mxu0 }
 0x83f   :  { %v748_v24 = vpack.c.bf16 %v747_v22, %v747_v22 }
 0x841   :  { %1085 = vmatmul.mubr.bf16.vlgmr.msra.gmra.mrb[8].mxu1 %v748_v24 }
 0x914   :  { %v852_v26 = vpop.f32.mrb[8].mxu1 }
 0x915   :  { %v853_v27 = vadd.f32 %v932_v25, %v852_v26  ;;  %v1086_v28 = vpop.f32.mrb[9].mxu1 }
 0x916   :  { %v855_v30 = vpop.f32.mrb[10].mxu1 }
 0x917   :  { %v877_v31 = vsel %vm111_vm1, %v853_v27, %v871_v29  ;;  %v1087_v32 = vpop.f32.mrb[11].mxu1 }
 0x918   :  { %v879_v33 = vsel %vm878_vm5, %v877_v31, %v875_v0 }
 0x919   :  { %v881_v34 = vsel %vm880_vm6, %v879_v33, 0.0 }
 0x91a   :  { %882 = vst [vmem:[%s1415_s5] sm:$0xff] %v881_v34 }
 0x91b   :  { %887 = vsyncpa [#allocation3], 1 }
 0x91c   :  { %888 = vsyncpa [#allocation5], 1 }
 0x91d   :  { %889 = vsyncpa [#allocation8], 1 }

</bundles_post_ra>
